<compile_context>
chip_gen: v7x
topology: tpu7x:2x2x1
jax: 0.10.0
libtpu: 0.0.40
codegen_flags: <defaults>
</compile_context>

<pallas_src>
import functools

import jax
import jax.numpy as jnp
from jax.experimental import pallas as pl
from jax.experimental.pallas import tpu as pltpu


def _attn_kernel_nomask(q_ref, k_ref, v_ref, o_ref, *, inv_scale):
    # refs: (Bb, Lq, dk) / (Bb, Lk, dk) / (Bb, Lk, dv) / (Bb, Lq, dv)
    q = q_ref[...] * inv_scale                       # fold 1/sqrt(dk) into Q
    # scores: contract on the last dim of both operands (no explicit K transpose)
    w = jnp.einsum("bqd,bkd->bqk", q, k_ref[...],
                   preferred_element_type=jnp.float32)
    # numerically-stable softmax along the last axis
    w = w - jnp.max(w, axis=-1, keepdims=True)
    p = jnp.exp(w)
    p = p * pl.reciprocal(jnp.sum(p, axis=-1, keepdims=True), approx=True)
    o = jnp.einsum("bqk,bkd->bqd", p.astype(v_ref.dtype), v_ref[...],
                   preferred_element_type=jnp.float32)
    o_ref[...] = o.astype(o_ref.dtype)


def _attn_kernel_mask(q_ref, k_ref, v_ref, m_ref, o_ref, *, inv_scale):
    # refs: (Bb, Lq, dk) / (Bb, Lk, dk) / (Bb, Lk, dv) / (Bb, Lq, Lk) int8 / (Bb, Lq, dv)
    q = q_ref[...] * inv_scale
    w = jnp.einsum("bqd,bkd->bqk", q, k_ref[...],
                   preferred_element_type=jnp.float32)
    # masked_fill_(mask, -inf); applying after the scale is identical (-inf/scale == -inf)
    w = jnp.where(m_ref[...] != 0, -jnp.inf, w)
    w = w - jnp.max(w, axis=-1, keepdims=True)
    p = jnp.exp(w)
    p = p * pl.reciprocal(jnp.sum(p, axis=-1, keepdims=True), approx=True)
    o = jnp.einsum("bqk,bkd->bqd", p.astype(v_ref.dtype), v_ref[...],
                   preferred_element_type=jnp.float32)
    o_ref[...] = o.astype(o_ref.dtype)


def _choose_block_batch(B, Lq, Lk, d_q, dv, itemsize, mask_itemsize):
    """Largest divisor of B whose per-step VMEM footprint stays within a
    conservative budget (x2 for double-buffering fits even v5e's 16 MiB scoped
    default and v7x's 64 MiB physical VMEM)."""
    per_batch = itemsize * (Lq * d_q + Lk * d_q + Lk * dv + Lq * dv) \
        + mask_itemsize * Lq * Lk
    budget = 4 * 1024 * 1024
    target = int(min(B, 64, max(1, budget // max(per_batch, 1))))
    for bb in range(target, 0, -1):
        if B % bb == 0:
            return bb
    return 1


def attention(Q, K, V, mask=None, dk=64):
    """Pallas implementation of the PyTorch `Attention.forward`."""
    B, Lq, d_q = Q.shape
    _, Lk, _ = K.shape
    dv = V.shape[-1]
    out_dtype = Q.dtype
    inv_scale = 1.0 / (float(dk) ** 0.5)

    mask_itemsize = 1 if mask is not None else 0
    Bb = _choose_block_batch(B, Lq, Lk, d_q, dv,
                             jnp.dtype(Q.dtype).itemsize, mask_itemsize)
    grid = (B // Bb,)

    in_specs = [
        pl.BlockSpec((Bb, Lq, d_q), lambda b: (b, 0, 0)),
        pl.BlockSpec((Bb, Lk, d_q), lambda b: (b, 0, 0)),
        pl.BlockSpec((Bb, Lk, dv), lambda b: (b, 0, 0)),
    ]
    out_spec = pl.BlockSpec((Bb, Lq, dv), lambda b: (b, 0, 0))

    if mask is None:
        kernel = functools.partial(_attn_kernel_nomask, inv_scale=inv_scale)
        args = (Q, K, V)
    else:
        assert mask.shape == (B, Lq, Lk)
        kernel = functools.partial(_attn_kernel_mask, inv_scale=inv_scale)
        in_specs.append(pl.BlockSpec((Bb, Lq, Lk), lambda b: (b, 0, 0)))
        args = (Q, K, V, mask.astype(jnp.int8))

    # TODO(synk): for Lq/Lk in the hundreds+ move to a flash-style Lk-tiled online
    # softmax (O(Lq*dk) VMEM) instead of holding the full (Lq, Lk) score tile.
    return pl.pallas_call(
        kernel,
        out_shape=jax.ShapeDtypeStruct((B, Lq, dv), out_dtype),
        grid_spec=pltpu.PrefetchScalarGridSpec(
            num_scalar_prefetch=0,
            grid=grid,
            in_specs=in_specs,
            out_specs=out_spec,
        ),
        compiler_params=pltpu.CompilerParams(
            dimension_semantics=("parallel",)),
    )(*args)


def _reference_attention(Q, K, V, mask=None, dk=64):
    w = jnp.einsum("bqd,bkd->bqk",
                   Q.astype(jnp.float32), K.astype(jnp.float32))
    if mask is not None:
        w = jnp.where(mask, -jnp.inf, w)
    w = jax.nn.softmax(w / (dk ** 0.5), axis=-1)
    return jnp.einsum("bqk,bkd->bqd", w, V.astype(jnp.float32))


if __name__ == "__main__":
    key = jax.random.PRNGKey(0)
    kq, kk, kv = jax.random.split(key, 3)

    B, Lq, Lk, dk_dim, dv = 4, 8, 8, 64, 64
    Q = jax.random.normal(kq, (B, Lq, dk_dim), jnp.float32)
    K = jax.random.normal(kk, (B, Lk, dk_dim), jnp.float32)
    V = jax.random.normal(kv, (B, Lk, dv), jnp.float32)

    # --- no-mask path (no zero mask tensor is materialized or streamed) ---
    out = jax.block_until_ready(attention(Q, K, V, mask=None, dk=dk_dim))
    ref = _reference_attention(Q, K, V, mask=None, dk=dk_dim)
    assert out.shape == (B, Lq, dv)
    assert out.dtype == Q.dtype
    assert jnp.allclose(out, ref, atol=2e-3, rtol=2e-3)

    # --- masked path (causal mask; True = masked / filled with -inf) ---
    causal = jnp.triu(jnp.ones((Lq, Lk), jnp.bool_), k=1)
    mask = jnp.broadcast_to(causal, (B, Lq, Lk))
    out_m = jax.block_until_ready(attention(Q, K, V, mask=mask, dk=dk_dim))
    ref_m = _reference_attention(Q, K, V, mask=mask, dk=dk_dim)
    assert out_m.shape == (B, Lq, dv)
    assert jnp.allclose(out_m, ref_m, atol=2e-3, rtol=2e-3)

    print("KERNEL_OK")
</pallas_src>

<mosaic_0001>
module attributes {stable_mosaic.version = 11 : i64} {
  func.func @_attn_kernel_nomask(%arg0: i32, %arg1: memref<4x8x64xf32, #tpu.memory_space<vmem>>, %arg2: memref<4x8x64xf32, #tpu.memory_space<vmem>>, %arg3: memref<4x8x64xf32, #tpu.memory_space<vmem>>, %arg4: memref<4x8x64xf32, #tpu.memory_space<vmem>>) attributes {dimension_semantics = [#tpu.dimension_semantics<parallel>], iteration_bounds = array<i64: 1>, scalar_prefetch = 0 : i64, scratch_operands = 0 : i64, tpu.core_type = #tpu.core_type<tc>, window_params = [{transform_indices = @transform_0, window_bounds = array<i64: 4, 8, 64>}, {transform_indices = @transform_1, window_bounds = array<i64: 4, 8, 64>}, {transform_indices = @transform_2, window_bounds = array<i64: 4, 8, 64>}, {transform_indices = @transform_3, window_bounds = array<i64: 4, 8, 64>}]} {
    %c0 = arith.constant 0 : index
    %c0_0 = arith.constant 0 : index
    %c0_1 = arith.constant 0 : index
    %0 = vector.load %arg1[%c0, %c0_0, %c0_1] : memref<4x8x64xf32, #tpu.memory_space<vmem>>, vector<4x8x64xf32>
    %cst = arith.constant 1.250000e-01 : f32
    %1 = vector.broadcast %cst : f32 to vector<4x8x64xf32>
    %2 = arith.mulf %0, %1 : vector<4x8x64xf32>
    %c0_2 = arith.constant 0 : index
    %c0_3 = arith.constant 0 : index
    %c0_4 = arith.constant 0 : index
    %3 = vector.load %arg2[%c0_2, %c0_3, %c0_4] : memref<4x8x64xf32, #tpu.memory_space<vmem>>, vector<4x8x64xf32>
    "tpu.trace_start"() <{level = 10 : i32, message = "bqd,bkd->bqk"}> : () -> ()
    %cst_5 = arith.constant dense<0.000000e+00> : vector<4x8x8xf32>
    %4 = tpu.matmul %2, %3, %cst_5 {dimension_numbers = #tpu.dot_dimension_numbers<[2], [2], [1], [1], [0, 0, 0, 1, 1, 1], [0], [0]>} : vector<4x8x64xf32>, vector<4x8x64xf32>, vector<4x8x8xf32> -> vector<4x8x8xf32>
    "tpu.trace_stop"() : () -> ()
    %cst_6 = arith.constant dense<0xFF800000> : vector<4x8xf32>
    %5 = vector.multi_reduction <maximumf>, %4, %cst_6 [2] : vector<4x8x8xf32> to vector<4x8xf32>
    %6 = vector.shape_cast %5 : vector<4x8xf32> to vector<4x8x1xf32>
    %7 = vector.broadcast %6 : vector<4x8x1xf32> to vector<4x8x8xf32>
    %8 = arith.subf %4, %7 : vector<4x8x8xf32>
    %9 = math.exp %8 : vector<4x8x8xf32>
    %cst_7 = arith.constant dense<0.000000e+00> : vector<4x8xf32>
    %10 = vector.multi_reduction <add>, %9, %cst_7 [2] : vector<4x8x8xf32> to vector<4x8xf32>
    %11 = vector.shape_cast %10 : vector<4x8xf32> to vector<4x8x1xf32>
    %12 = tpu.reciprocal %11 {approx = true} : vector<4x8x1xf32> -> vector<4x8x1xf32>
    %13 = vector.broadcast %12 : vector<4x8x1xf32> to vector<4x8x8xf32>
    %14 = arith.mulf %9, %13 : vector<4x8x8xf32>
    %c0_8 = arith.constant 0 : index
    %c0_9 = arith.constant 0 : index
    %c0_10 = arith.constant 0 : index
    %15 = vector.load %arg3[%c0_8, %c0_9, %c0_10] : memref<4x8x64xf32, #tpu.memory_space<vmem>>, vector<4x8x64xf32>
    "tpu.trace_start"() <{level = 10 : i32, message = "bqk,bkd->bqd"}> : () -> ()
    %cst_11 = arith.constant dense<0.000000e+00> : vector<4x8x64xf32>
    %16 = tpu.matmul %14, %15, %cst_11 {dimension_numbers = #tpu.dot_dimension_numbers<[2], [1], [1], [2], [0, 0, 0, 1, 1, 2], [0], [0]>} : vector<4x8x8xf32>, vector<4x8x64xf32>, vector<4x8x64xf32> -> vector<4x8x64xf32>
    "tpu.trace_stop"() : () -> ()
    %c0_12 = arith.constant 0 : index
    %c0_13 = arith.constant 0 : index
    %c0_14 = arith.constant 0 : index
    %17 = vector.load %arg4[%c0_12, %c0_13, %c0_14] : memref<4x8x64xf32, #tpu.memory_space<vmem>>, vector<4x8x64xf32>
    tpu.vector_store %arg4[%c0_12, %c0_13, %c0_14], %16 {strides = array<i32>} : memref<4x8x64xf32, #tpu.memory_space<vmem>>, vector<4x8x64xf32>,
    return
  }
  func.func @transform_0(%arg0: i32) -> (i32, i32, i32) {
    %c0_i32 = arith.constant 0 : i32
    %c0_i32_0 = arith.constant 0 : i32
    %c0_i32_1 = arith.constant 0 : i32
    return %arg0, %c0_i32, %c0_i32_0 : i32, i32, i32
  }
  func.func @transform_1(%arg0: i32) -> (i32, i32, i32) {
    %c0_i32 = arith.constant 0 : i32
    %c0_i32_0 = arith.constant 0 : i32
    %c0_i32_1 = arith.constant 0 : i32
    return %arg0, %c0_i32, %c0_i32_0 : i32, i32, i32
  }
  func.func @transform_2(%arg0: i32) -> (i32, i32, i32) {
    %c0_i32 = arith.constant 0 : i32
    %c0_i32_0 = arith.constant 0 : i32
    %c0_i32_1 = arith.constant 0 : i32
    return %arg0, %c0_i32, %c0_i32_0 : i32, i32, i32
  }
  func.func @transform_3(%arg0: i32) -> (i32, i32, i32) {
    %c0_i32 = arith.constant 0 : i32
    %c0_i32_0 = arith.constant 0 : i32
    %c0_i32_1 = arith.constant 0 : i32
    return %arg0, %c0_i32, %c0_i32_0 : i32, i32, i32
  }
}

</mosaic_0001>

<bundles_post_ra>
// kernel: tpu_custom_call.1
= control target key start
LH: loop header
LB: loop body
LE: loop exit
PB: predicated region body
PF: predicated region fallthrough
CT: control target
= control target key end

     0   :  { %8 = vsyncpa [#allocation3], 0  ;;  %s1065_s0 = inlined_call_operand.hbm [shape: f32[4,8,64], index: 0, kind: input, shape index: {}]   ;;  %s1066_s1 = inlined_call_operand.hbm [shape: f32[4,8,64], index: 1, kind: input, shape index: {}]   ;;  %s1067_s2 = inlined_call_operand.hbm [shape: f32[4,8,64], index: 2, kind: input, shape index: {}]   ;;  %s1068_s3 = inlined_call_operand.hbm [shape: f32[4,8,64], index: 3, kind: output, shape index: {}]  }
   0x1   :  { %9 = vsyncpa [#allocation6], 0 }
   0x2   :  { %10 = vsyncpa [#allocation4], 0  ;;  %s922_s12 = smov [#allocation5]   ;;  %s923_s14 = smov [#allocation2]  }
   0x3   :  { %s28_s13 = sshll.u32 %s922_s12, 4  ;;  %s16_s15 = sshll.u32 %s923_s14, 4  ;;  %s29_s13 = int_to_ptr.vmem [resolvable:$true] %s28_s13  ;;  %s950_s15 = int_to_ptr.vmem [resolvable:$true] %s16_s15 }
   0x4   :  { %s828_s18 = scalar_lea.hbm %s1066_s1, 512 }
   0x5   :  { %p829_p0 = scmp.ne.s32.totalorder %s1066_s1, %s828_s18  ;;  %p832_p1 = scmp.lt.u32.totalorder %s828_s18, %s1066_s1 }
   0x7   :  { %p834_p2 = pnand %p832_p1, %p829_p0 }
   0x9   :  { %837 = shalt.err (!%p834_p2)
}
   0xa   :  { %s838_s23 = scalar_lea.vmem %s29_s13, 512  ;;  %p843_p4 = scmp.lt.s32.totalorder %s29_s13, %s29_s13 }
   0xb   :  { %p839_p3 = scmp.ne.s32.totalorder %s29_s13, %s838_s23  ;;  %p844_p5 = scmp.lt.s32.totalorder %s838_s23, %s838_s23 }
   0xd   :  { %p845_p6 = por %p844_p5, %p843_p4 }
   0xf   :  { %p846_p7 = pnand %p845_p6, %p839_p3 }
  0x11   :  { %849 = shalt.err (!%p846_p7)
}
  0x12   :  { %s924_s24 = smov 128   ;;  %s925_s25 = smov 8  }
  0x13   :  { %34 = dma.hbm_to_vmem [thread:$0]  %s1066_s1, 512, %s29_s13, [#allocation6], %s924_s24, %s924_s24, %s925_s25  }
  0x14   :  { %s850_s30 = scalar_lea.hbm %s1065_s0, 512 }
  0x15   :  { %p851_p8 = scmp.ne.s32.totalorder %s1065_s0, %s850_s30  ;;  %p854_p9 = scmp.lt.u32.totalorder %s850_s30, %s1065_s0 }
  0x17   :  { %p856_p10 = pnand %p854_p9, %p851_p8 }
  0x19   :  { %859 = shalt.err (!%p856_p10)
}
  0x1a   :  { %s860_s8 = scalar_lea.vmem %s950_s15, 512  ;;  %p865_p12 = scmp.lt.s32.totalorder %s950_s15, %s950_s15 }
  0x1b   :  { %p861_p11 = scmp.ne.s32.totalorder %s950_s15, %s860_s8  ;;  %p866_p13 = scmp.lt.s32.totalorder %s860_s8, %s860_s8 }
  0x1d   :  { %p867_p0 = por %p866_p13, %p865_p12 }
  0x1f   :  { %p868_p1 = pnand %p867_p0, %p861_p11 }
  0x21   :  { %871 = shalt.err (!%p868_p1)
}
  0x22   :  { %22 = dma.hbm_to_vmem [thread:$0]  %s1065_s0, 512, %s950_s15, [#allocation3], %s924_s24, %s924_s24, %s925_s25  }
  0x23   :  { %s926_s10 = smov [#allocation7]   ;;  %s872_s14 = scalar_lea.hbm %s1067_s2, 512 }
  0x24   :  { %s40_s11 = sshll.u32 %s926_s10, 4  ;;  %p873_p2 = scmp.ne.s32.totalorder %s1067_s2, %s872_s14  ;;  %s41_s11 = int_to_ptr.vmem [resolvable:$true] %s40_s11 }
  0x25   :  { %p876_p3 = scmp.lt.u32.totalorder %s872_s14, %s1067_s2 }
  0x27   :  { %p878_p4 = pnand %p876_p3, %p873_p2 }
  0x29   :  { %881 = shalt.err (!%p878_p4)
}
  0x2a   :  { %s882_s20 = scalar_lea.vmem %s41_s11, 512  ;;  %p887_p6 = scmp.lt.s32.totalorder %s41_s11, %s41_s11 }
  0x2b   :  { %p883_p5 = scmp.ne.s32.totalorder %s41_s11, %s882_s20  ;;  %p888_p7 = scmp.lt.s32.totalorder %s882_s20, %s882_s20 }
  0x2d   :  { %p889_p8 = por %p888_p7, %p887_p6 }
  0x2f   :  { %p890_p9 = pnand %p889_p8, %p883_p5 }
  0x31   :  { %893 = shalt.err (!%p890_p9)
}
  0x32   :  { %46 = dma.hbm_to_vmem [thread:$0]  %s1067_s2, 512, %s41_s11, [#allocation6], %s924_s24, %s924_s24, %s925_s25  }
  0x33   :  { %916 = dma.done.wait [#allocation3], 512  }
  0x34   :  { %917 = vsyncadd [#allocation3], 4294966784 }
  0x35   :  { %918 = dma.done.wait [#allocation6], 1024  }
  0x36   :  { %919 = vsyncadd [#allocation6], 4294966272  ;;  %v927_v0 = vmov 0.0   ;;  %vm928_vm0 = vmmov 0   ;;  %vm68_vm1 = vcmask 523264   ;;  %v64_v1 = vld [vmem:[#allocation5] sm:$0xff] }
  0x37   :  { %764 = vmatprep.subr.mxu0 %v927_v0  ;;  %766 = vmatprep.mubr.msk.f32.mxu0 %vm928_vm0, %v927_v0  ;;  %v56_v2 = vld [vmem:[#allocation2] sm:$0xff]  ;;  %v65_v3 = vld [vmem:[#allocation5 + $0x8] sm:$0xff]  ;;  %v58_v6 = vld [vmem:[#allocation2 + $0x10] sm:$0xff]  ;;  %vm373_vm2 = vcmask 64512   ;;  %s929_s2 = smov [#allocation8]  }
  0x38   :  { %769 = vmatprep.subr.mxu1 %v927_v0  ;;  %771 = vmatprep.mubr.msk.f32.mxu1 %vm928_vm0, %v927_v0  ;;  %v60_v4 = vmul.f32 0.125, %v56_v2  ;;  %v57_v5 = vld [vmem:[#allocation2 + $0x8] sm:$0xff]  ;;  %v66_v7 = vld [vmem:[#allocation5 + $0x10] sm:$0xff]  ;;  %v59_v9 = vld [vmem:[#allocation2 + $0x18] sm:$0xff]  ;;  %v62_v11 = vmul.f32 0.125, %v58_v6  ;;  %s723_s21 = sshll.u32 %s929_s2, 4  ;;  %s724_s21 = int_to_ptr.vmem [resolvable:$true] %s723_s21 }
  0x39   :  { %765 = vmatpush3.xpose.msk.msra.mxu0 %vm68_vm1, %v64_v1  ;;  %770 = vmatpush3.xpose.msk.msra.mxu1 %vm68_vm1, %v65_v3  ;;  %v61_v8 = vmul.f32 0.125, %v57_v5  ;;  %v67_v10 = vld [vmem:[#allocation5 + $0x18] sm:$0xff]  ;;  %v63_v12 = vmul.f32 0.125, %v59_v9  ;;  %v418_v45 = vld [vmem:[#allocation7] sm:$0xff]  ;;  %v419_v46 = vld [vmem:[#allocation7 + $0x8] sm:$0xff]  ;;  %s894_s22 = scalar_lea.vmem %s724_s21, 512  ;;  %p899_p11 = scmp.lt.s32.totalorder %s724_s21, %s724_s21 }
  0x3a   :  { %774 = vmatprep.subr.mxu0 %v927_v0  ;;  %779 = vmatprep.subr.mxu1 %v927_v0  ;;  %v420_v53 = vld [vmem:[#allocation7 + $0x10] sm:$0xff]  ;;  %v421_v57 = vld [vmem:[#allocation7 + $0x18] sm:$0xff]  ;;  %p895_p10 = scmp.ne.s32.totalorder %s724_s21, %s894_s22  ;;  %p900_p12 = scmp.lt.s32.totalorder %s894_s22, %s894_s22 }
  0x3c   :  { %767 = vmatmul.mubr.msk.f32.vlgmr.msra.gmra.mrb[0].mxu0 %vm68_vm1, %v60_v4  ;;  %772 = vmatmul.mubr.msk.f32.vlgmr.msra.gmra.mrb[0].mxu1 %vm68_vm1, %v61_v8  ;;  %p901_p13 = por %p900_p12, %p899_p11 }
  0x3d   :  { %775 = vmatpush3.xpose.msk.msra.mxu0 %vm68_vm1, %v66_v7  ;;  %776 = vmatprep.mubr.msk.f32.mxu0 %vm928_vm0, %v927_v0 }
  0x3e   :  { %780 = vmatpush3.xpose.msk.msra.mxu1 %vm68_vm1, %v67_v10  ;;  %781 = vmatprep.mubr.msk.f32.mxu1 %vm928_vm0, %v927_v0  ;;  %p902_p0 = pnand %p901_p13, %p895_p10 }
  0x3f   :  { %784 = vmatprep.subr.mxu0 %v927_v0  ;;  %789 = vmatprep.subr.mxu1 %v927_v0 }
  0x40   :  { %777 = vmatmul.mubr.msk.f32.vlgmr.msra.gmra.mrb[2].mxu0 %vm68_vm1, %v62_v11 }
  0x41   :  { %782 = vmatmul.mubr.msk.f32.vlgmr.msra.gmra.mrb[2].mxu1 %vm68_vm1, %v63_v12  ;;  %786 = vmatprep.mubr.msk.f32.mxu0 %vm928_vm0, %v927_v0 }
  0x42   :  { %791 = vmatprep.mubr.msk.f32.mxu1 %vm928_vm0, %v927_v0  ;;  %785 = vmatpush3.msra.mxu0 %v418_v45 }
  0x43   :  { %794 = vmatprep.subr.mxu0 %v927_v0  ;;  %790 = vmatpush3.msra.mxu1 %v419_v46 }
  0x44   :  { %799 = vmatprep.subr.mxu1 %v927_v0 }
 0x10f   :  { %v141_v13 = vpop.f32.mrb[0].mxu0  ;;  %v217_v14 = vpop.f32.mrb[0].mxu1 }
 0x110   :  { %v768_v15 = vpop.f32.mrb[1].mxu0  ;;  %v374_v16 = vsel %vm373_vm2, %v141_v13, -inf  ;;  %v773_v17 = vpop.f32.mrb[1].mxu1  ;;  %v377_v18 = vsel %vm373_vm2, %v217_v14, -inf }
 0x111   :  { %375 = vmax.xlane.f32.xlu0 %v374_v16 }
 0x113   :  { %v293_v19 = vpop.f32.mrb[2].mxu0 }
 0x114   :  { %v778_v20 = vpop.f32.mrb[3].mxu0  ;;  %v380_v21 = vsel %vm373_vm2, %v293_v19, -inf  ;;  %v369_v22 = vpop.f32.mrb[2].mxu1 }
 0x115   :  { %378 = vmax.xlane.f32.xlu0 %v377_v18  ;;  %381 = vmax.xlane.f32.xlu1 %v380_v21  ;;  %v783_v23 = vpop.f32.mrb[3].mxu1  ;;  %v383_v24 = vsel %vm373_vm2, %v369_v22, -inf }
 0x119   :  { %384 = vmax.xlane.f32.xlu1 %v383_v24 }
 0x19e   :  { %v376_v25 = vpop.xlane.xlu0 %375 }
 0x19f   :  { %v386_v26 = vsub.f32 %v141_v13, %v376_v25 }
 0x1a1   :  { %v390_v27 = vmul.f32 1.442695, %v386_v26 }
 0x1a2   :  { %v379_v28 = vpop.xlane.xlu0 %378  ;;  %v382_v29 = vpop.xlane.xlu1 %381 }
 0x1a3   :  { %812 = vpow2.f32 %v390_v27  ;;  %v387_v30 = vsub.f32 %v217_v14, %v379_v28  ;;  %v388_v31 = vsub.f32 %v293_v19, %v382_v29 }
 0x1a5   :  { %v392_v32 = vmul.f32 1.442695, %v387_v30  ;;  %v394_v33 = vmul.f32 1.442695, %v388_v31 }
 0x1a6   :  { %v385_v34 = vpop.xlane.xlu1 %384 }
 0x1a7   :  { %814 = vpow2.f32 %v392_v32  ;;  %v389_v35 = vsub.f32 %v369_v22, %v385_v34 }
 0x1a8   :  { %816 = vpow2.f32 %v394_v33 }
 0x1a9   :  { %v396_v36 = vmul.f32 1.442695, %v389_v35 }
 0x1ab   :  { %818 = vpow2.f32 %v396_v36 }
 0x1ad   :  { %v813_v37 = vpop.eup %812 }
 0x1ae   :  { %v398_v38 = vsel %vm373_vm2, %v813_v37, 0.0 }
 0x1af   :  { %399 = vadd.xlane.f32.xlu0 %v398_v38 }
 0x1b1   :  { %v815_v39 = vpop.eup %814 }
 0x1b2   :  { %v817_v40 = vpop.eup %816  ;;  %v401_v41 = vsel %vm373_vm2, %v815_v39, 0.0 }
 0x1b3   :  { %402 = vadd.xlane.f32.xlu1 %v401_v41  ;;  %v404_v42 = vsel %vm373_vm2, %v817_v40, 0.0 }
 0x1b4   :  { %405 = vadd.xlane.f32.xlu0 %v404_v42 }
 0x1b5   :  { %v819_v43 = vpop.eup %818 }
 0x1b6   :  { %v407_v44 = vsel %vm373_vm2, %v819_v43, 0.0 }
 0x1b7   :  { %408 = vadd.xlane.f32.xlu1 %v407_v44 }
 0x23c   :  { %v400_v47 = vpop.xlane.xlu0 %399 }
 0x23d   :  { %820 = vrcp.f32 %v400_v47 }
 0x240   :  { %v403_v48 = vpop.xlane.xlu1 %402 }
 0x241   :  { %v406_v49 = vpop.xlane.xlu0 %405  ;;  %822 = vrcp.f32 %v403_v48 }
 0x242   :  { %824 = vrcp.f32 %v406_v49 }
 0x244   :  { %v409_v50 = vpop.xlane.xlu1 %408 }
 0x245   :  { %826 = vrcp.f32 %v409_v50 }
 0x247   :  { %v821_v51 = vpop.eup %820 }
 0x248   :  { %v414_v52 = vmul.f32 %v821_v51, %v813_v37 }
 0x24a   :  { %787 = vmatmul.mubr.msk.f32.vlgmr.msra.gmra.mrb[4].mxu0 %vm373_vm2, %v414_v52 }
 0x24b   :  { %v823_v54 = vpop.eup %822  ;;  %795 = vmatpush3.msra.mxu0 %v420_v53  ;;  %796 = vmatprep.mubr.msk.f32.mxu0 %vm928_vm0, %v927_v0 }
 0x24c   :  { %v825_v55 = vpop.eup %824  ;;  %v415_v56 = vmul.f32 %v823_v54, %v815_v39 }
 0x24d   :  { %v416_v58 = vmul.f32 %v825_v55, %v817_v40 }
 0x24e   :  { %792 = vmatmul.mubr.msk.f32.vlgmr.msra.gmra.mrb[4].mxu1 %vm373_vm2, %v415_v56 }
 0x24f   :  { %v827_v59 = vpop.eup %826  ;;  %797 = vmatmul.mubr.msk.f32.vlgmr.msra.gmra.mrb[6].mxu0 %vm373_vm2, %v416_v58  ;;  %800 = vmatpush3.msra.mxu1 %v421_v57 }
 0x250   :  { %v417_v60 = vmul.f32 %v827_v59, %v819_v43  ;;  %801 = vmatprep.mubr.msk.f32.mxu1 %vm928_vm0, %v927_v0 }
 0x252   :  { %802 = vmatmul.mubr.msk.f32.vlgmr.msra.gmra.mrb[6].mxu1 %vm373_vm2, %v417_v60 }
 0x31d   :  { %v491_v61 = vpop.f32.mrb[4].mxu0 }
 0x31e   :  { %714 = vst.msk [vmem:[#allocation8] sm:$0xff] %vm68_vm1, %v491_v61  ;;  %v788_v62 = vpop.f32.mrb[5].mxu0 }
 0x321   :  { %v564_v63 = vpop.f32.mrb[4].mxu1 }
 0x322   :  { %715 = vst.msk [vmem:[#allocation8 + $0x8] sm:$0xff] %vm68_vm1, %v564_v63  ;;  %v637_v1 = vpop.f32.mrb[6].mxu0  ;;  %v793_v2 = vpop.f32.mrb[5].mxu1 }
 0x323   :  { %716 = vst.msk [vmem:[#allocation8 + $0x10] sm:$0xff] %vm68_vm1, %v637_v1  ;;  %v798_v3 = vpop.f32.mrb[7].mxu0 }
 0x325   :  { %v710_v4 = vpop.f32.mrb[6].mxu1 }
 0x326   :  { %717 = vst.msk [vmem:[#allocation8 + $0x18] sm:$0xff] %vm68_vm1, %v710_v4  ;;  %v803_v0 = vpop.f32.mrb[7].mxu1 }
 0x327   :  { %905 = shalt.err (!%p902_p0)
}
 0x328   :  { %s906_s27 = scalar_lea.hbm %s1068_s3, 512 }
 0x329   :  { %p907_p1 = scmp.ne.s32.totalorder %s1068_s3, %s906_s27  ;;  %p910_p2 = scmp.lt.u32.totalorder %s906_s27, %s1068_s3 }
 0x32b   :  { %p912_p3 = pnand %p910_p2, %p907_p1 }
 0x32d   :  { %915 = shalt.err (!%p912_p3)
}
 0x32e   :  { %729 = dma.vmem_to_hbm [thread:$0]  %s724_s21, 512, %s1068_s3, [#allocation4], %s924_s24, %s924_s24, %s925_s25  }
 0x32f   :  { %920 = dma.done.wait [#allocation4], 512  }
 0x330   :  { %921 = vsyncadd [#allocation4], 4294966784 }
 0x331   :  { %733 = vsyncpa [#allocation3], 1 }
 0x332   :  { %734 = vsyncpa [#allocation6], 1 }
 0x333   :  { %735 = vsyncpa [#allocation4], 1 }

</bundles_post_ra>
